<compile_context>
chip_gen: v5e
topology: v5e:2x2
jax: 0.10.0
libtpu: 0.0.40
codegen_flags: <defaults>
</compile_context>

<pallas_src>
import math
from functools import partial

import jax
import jax.numpy as jnp
from jax.experimental import pallas as pl
from jax.experimental.pallas import tpu as pltpu

_GN_EPS = 1e-5


# --------------------------- in-kernel helpers ---------------------------

def _gn_relu(x, gamma, beta, onehot, onehot_t):
    """GroupNorm (per-sample, per-group, biased var) + ReLU for one sample.

    x: (L, C) f32; gamma/beta: (1, C); onehot: (C, G); onehot_t: (G, C).
    Stats are an L-reduction (XLU) followed by tiny M=1 one-hot matmuls; the
    MXU is kept free for the conv matmuls.
    """
    L, C = x.shape
    G = onehot.shape[-1]
    cg = C // G
    inv_n = 1.0 / float(L * cg)

    s_c = jnp.sum(x, axis=0, keepdims=True)                              # (1, C)
    mean_g = jnp.dot(s_c, onehot, preferred_element_type=jnp.float32) * inv_n
    mean_c = jnp.dot(mean_g, onehot_t, preferred_element_type=jnp.float32)  # (1, C)

    xc = x - mean_c
    ss_c = jnp.sum(xc * xc, axis=0, keepdims=True)                       # (1, C)
    var_g = jnp.dot(ss_c, onehot, preferred_element_type=jnp.float32) * inv_n
    inv_c = jnp.dot(jax.lax.rsqrt(var_g + _GN_EPS), onehot_t,
                    preferred_element_type=jnp.float32)                  # (1, C)

    y = xc * inv_c * gamma + beta
    return jnp.maximum(y, 0.0)


def _gn_relu_batched(x, gamma, beta, onehot, onehot_t):
    """Batched GroupNorm + ReLU (used by the grid-less head kernel). x: (B, L, C)."""
    B, L, C = x.shape
    G = onehot.shape[-1]
    cg = C // G
    inv_n = 1.0 / float(L * cg)

    s_c = jnp.sum(x, axis=1)                                             # (B, C)
    mean_g = jnp.dot(s_c, onehot, preferred_element_type=jnp.float32) * inv_n
    mean_c = jnp.dot(mean_g, onehot_t, preferred_element_type=jnp.float32)  # (B, C)

    xc = x - mean_c[:, None, :]
    ss_c = jnp.sum(xc * xc, axis=1)                                      # (B, C)
    var_g = jnp.dot(ss_c, onehot, preferred_element_type=jnp.float32) * inv_n
    inv_c = jnp.dot(jax.lax.rsqrt(var_g + _GN_EPS), onehot_t,
                    preferred_element_type=jnp.float32)                  # (B, C)

    y = xc * inv_c[:, None, :] * gamma + beta
    return jnp.maximum(y, 0.0)


def _conv1d_acc(xpad_ref, w_ref, *, L_out, K, stride):
    """Conv1d as K accumulated matmuls (no im2col slab).

    xpad_ref: (L_pad, Cin) zero-padded activation in VMEM (f32).
    w_ref   : (K, Cin, Cout) conv weight (bf16).
    Returns (L_out, Cout) f32.
    """
    Cout = w_ref.shape[-1]
    acc = jnp.zeros((L_out, Cout), jnp.float32)
    for k in range(K):  # static unroll: K strided VMEM tap loads, zero HBM traffic
        if stride == 1:
            tap = xpad_ref[pl.ds(k, L_out), :]
        else:
            tap = xpad_ref[pl.ds(k, L_out, stride), :]
        acc = acc + jnp.dot(tap.astype(jnp.bfloat16), w_ref[k],
                            preferred_element_type=jnp.float32)
    return acc


def _fill_padded(pad_ref, interior, pad, fill_value):
    """Halo-only fill of a (L_pad, C) scratch: pad rows get fill_value, the
    interior is written exactly once (no full-buffer pre-fill)."""
    L, C = interior.shape
    halo = jnp.full((pad, C), fill_value, pad_ref.dtype)
    pad_ref[pl.ds(0, pad), :] = halo
    pad_ref[pl.ds(pad + L, pad), :] = halo
    pad_ref[pl.ds(pad, L), :] = interior.astype(pad_ref.dtype)


# ------------------------------ kernels ----------------------------------

def _stem_kernel(x_ref, w_ref, o_ref, xpad_ref, cpad_ref, *,
                 K, stride, pool_k, pool_s, pool_p):
    """Fused stem (one sample): Conv1d(K, stride=2, pad) + MaxPool1d(3, 2, 1)."""
    _, L, Cin = x_ref.shape
    C0 = w_ref.shape[-1]
    pad = (K - 1) // 2
    L1 = (L + 2 * pad - K) // stride + 1
    L2 = (L1 + 2 * pool_p - pool_k) // pool_s + 1

    # zero-padded input in VMEM (halo-only fill)
    _fill_padded(xpad_ref, x_ref[0].astype(jnp.float32), pad, 0.0)

    h = _conv1d_acc(xpad_ref, w_ref, L_out=L1, K=K, stride=stride)       # (L1, C0)

    # fused max pool: -inf halos, strided taps, running max
    _fill_padded(cpad_ref, h, pool_p, -jnp.inf)
    y = cpad_ref[pl.ds(0, L2, pool_s), :]
    for k in range(1, pool_k):
        y = jnp.maximum(y, cpad_ref[pl.ds(k, L2, pool_s), :])
    o_ref[0] = y.astype(o_ref.dtype)


def _block_kernel(*refs, K, stride, has_shortcut):
    """Fused BasicBlock (one sample):
    shortcut(x) ; GN1+ReLU -> conv1(stride) -> GN2+ReLU -> conv2 ; add."""
    if has_shortcut:
        (x_ref, w1_ref, w2_ref, wsc_ref,
         g1_ref, b1_ref, oh1_ref, oh1t_ref,
         g2_ref, b2_ref, oh2_ref, oh2t_ref,
         o_ref, h1pad_ref, h2pad_ref) = refs
    else:
        (x_ref, w1_ref, w2_ref,
         g1_ref, b1_ref, oh1_ref, oh1t_ref,
         g2_ref, b2_ref, oh2_ref, oh2t_ref,
         o_ref, h1pad_ref, h2pad_ref) = refs
        wsc_ref = None

    _, L, Cin = x_ref.shape
    Cout = w2_ref.shape[-1]
    pad = (K - 1) // 2
    L1 = (L + 2 * pad - K) // stride + 1

    x = x_ref[0].astype(jnp.float32)                                     # (L, Cin)

    # shortcut applied to the RAW input (matches the PyTorch module)
    if has_shortcut:
        if stride == 1:
            xs = x
        else:
            xs = x_ref[:, pl.ds(0, L1, stride), :].reshape(L1, Cin).astype(jnp.float32)
        sc = jnp.dot(xs.astype(jnp.bfloat16), wsc_ref[...],
                     preferred_element_type=jnp.float32)                 # (L1, Cout)
    else:
        sc = x  # identity: stride == 1 and Cin == Cout

    # GN1 + ReLU -> conv1 (stride)
    h1 = _gn_relu(x, g1_ref[...], b1_ref[...], oh1_ref[...], oh1t_ref[...])
    _fill_padded(h1pad_ref, h1, pad, 0.0)
    c1 = _conv1d_acc(h1pad_ref, w1_ref, L_out=L1, K=K, stride=stride)    # (L1, Cout)

    # GN2 + ReLU -> conv2 (stride 1) -> residual add (f32)
    h2 = _gn_relu(c1, g2_ref[...], b2_ref[...], oh2_ref[...], oh2t_ref[...])
    _fill_padded(h2pad_ref, h2, pad, 0.0)
    c2 = _conv1d_acc(h2pad_ref, w2_ref, L_out=L1, K=K, stride=1)         # (L1, Cout)

    o_ref[0] = (c2 + sc).astype(o_ref.dtype)


def _head_kernel(x_ref, g_ref, b_ref, oh_ref, oht_ref, w_ref, bias_ref, o_ref):
    """Fused head: GroupNorm + ReLU + AdaptiveAvgPool1d(1) + Linear."""
    x = x_ref[...].astype(jnp.float32)
    y = _gn_relu_batched(x, g_ref[...], b_ref[...], oh_ref[...], oht_ref[...])
    pooled = jnp.mean(y, axis=1)                                         # (B, C)
    out = jnp.dot(pooled, w_ref[...], preferred_element_type=jnp.float32) + bias_ref[...]
    o_ref[...] = out.astype(o_ref.dtype)


# ------------------------------ wrappers ----------------------------------

def stem_pool_pallas(x, w, *, K, stride=2, pool_k=3, pool_s=2, pool_p=1):
    B, L, Cin = x.shape
    C0 = w.shape[-1]
    pad = (K - 1) // 2
    L1 = (L + 2 * pad - K) // stride + 1
    L2 = (L1 + 2 * pool_p - pool_k) // pool_s + 1
    return pl.pallas_call(
        partial(_stem_kernel, K=K, stride=stride,
                pool_k=pool_k, pool_s=pool_s, pool_p=pool_p),
        out_shape=jax.ShapeDtypeStruct((B, L2, C0), x.dtype),
        grid=(B,),
        in_specs=[
            pl.BlockSpec((1, L, Cin), lambda b: (b, 0, 0)),
            pl.BlockSpec((K, Cin, C0), lambda b: (0, 0, 0)),
        ],
        out_specs=pl.BlockSpec((1, L2, C0), lambda b: (b, 0, 0)),
        scratch_shapes=[
            pltpu.VMEM((L + 2 * pad, Cin), jnp.float32),        # zero-padded input
            pltpu.VMEM((L1 + 2 * pool_p, C0), jnp.float32),     # -inf padded conv out
        ],
        compiler_params=pltpu.CompilerParams(dimension_semantics=("parallel",)),
    )(x, w)


def basic_block_pallas(x, blk):
    B, L, Cin = x.shape
    K = blk["K"]
    stride = blk["stride"]
    Cout = blk["w2"].shape[-1]
    pad = (K - 1) // 2
    L1 = (L + 2 * pad - K) // stride + 1
    has_shortcut = blk["wsc"] is not None

    args = [x, blk["w1"], blk["w2"]]
    in_specs = [
        pl.BlockSpec((1, L, Cin), lambda b: (b, 0, 0)),
        pl.BlockSpec(blk["w1"].shape, lambda b: (0, 0, 0)),
        pl.BlockSpec(blk["w2"].shape, lambda b: (0, 0, 0)),
    ]
    if has_shortcut:
        args.append(blk["wsc"])
        in_specs.append(pl.BlockSpec(blk["wsc"].shape, lambda b: (0, 0)))
    for name in ("g1", "b1", "oh1", "oh1t", "g2", "b2", "oh2", "oh2t"):
        args.append(blk[name])
        in_specs.append(pl.BlockSpec(blk[name].shape, lambda b: (0, 0)))

    return pl.pallas_call(
        partial(_block_kernel, K=K, stride=stride, has_shortcut=has_shortcut),
        out_shape=jax.ShapeDtypeStruct((B, L1, Cout), x.dtype),
        grid=(B,),
        in_specs=in_specs,
        out_specs=pl.BlockSpec((1, L1, Cout), lambda b: (b, 0, 0)),
        scratch_shapes=[
            pltpu.VMEM((L + 2 * pad, Cin), jnp.float32),        # padded GN1 output
            pltpu.VMEM((L1 + 2 * pad, Cout), jnp.float32),      # padded GN2 output
        ],
        compiler_params=pltpu.CompilerParams(dimension_semantics=("parallel",)),
    )(*args)


def head_pallas(x, gamma, beta, onehot, onehot_t, fc_w, fc_b):
    B, L, C = x.shape
    O = fc_w.shape[1]
    return pl.pallas_call(
        _head_kernel,
        out_shape=jax.ShapeDtypeStruct((B, O), x.dtype),
    )(x, gamma, beta, onehot, onehot_t, fc_w, fc_b)


# ------------------------- parameters / forward ---------------------------

def _kaiming_conv(key, cout, cin, k):
    # kaiming_normal_(mode='fan_out', nonlinearity='relu'): std = sqrt(2/(cout*k))
    std = math.sqrt(2.0 / (cout * k))
    return jax.random.normal(key, (cout, cin, k), jnp.float32) * std


def _conv_as_kio(w):
    # torch (Cout, Cin, K) -> (K, Cin, Cout) bf16, done ONCE at init
    return jnp.transpose(w, (2, 1, 0)).astype(jnp.bfloat16)


def _group_onehot(C):
    assert C % 16 == 0, f"norm1d default needs C % 16 == 0, got C={C}"
    G = C // 16  # norm1d default: num_groups = C // 16
    cg = C // G
    oh = (jnp.arange(C)[:, None] // cg == jnp.arange(G)[None, :]).astype(jnp.float32)
    return oh, jnp.transpose(oh)


def init_params(key, *, stages, num_outputs, in_channels, width,
                kernel_size, stem_kernel_size):
    if isinstance(kernel_size, int):
        kernel_size = [kernel_size] * len(stages)
    widths = [width * 2 ** i for i in range(len(stages))]
    keys = iter(jax.random.split(key, 256))

    params = {}
    c0 = widths[0]
    params["stem_w"] = _conv_as_kio(
        _kaiming_conv(next(keys), c0, in_channels, stem_kernel_size))
    params["stem_k"] = stem_kernel_size

    blocks = []
    in_c = c0
    for i, num_layers in enumerate(stages):
        stage_stride = 1 if i == 0 else 2
        out_c = widths[i]
        for j in range(num_layers):
            s = stage_stride if j == 0 else 1
            ic = in_c if j == 0 else out_c
            blk = {"stride": s, "K": kernel_size[i]}
            if s > 1 or ic != out_c:
                wsc = _kaiming_conv(next(keys), out_c, ic, 1)[:, :, 0]   # (Cout, Cin)
                blk["wsc"] = jnp.transpose(wsc).astype(jnp.bfloat16)     # (Cin, Cout)
            else:
                blk["wsc"] = None
            blk["g1"] = jnp.ones((1, ic), jnp.float32)
            blk["b1"] = jnp.zeros((1, ic), jnp.float32)
            blk["oh1"], blk["oh1t"] = _group_onehot(ic)
            blk["w1"] = _conv_as_kio(
                _kaiming_conv(next(keys), out_c, ic, kernel_size[i]))
            blk["g2"] = jnp.ones((1, out_c), jnp.float32)
            blk["b2"] = jnp.zeros((1, out_c), jnp.float32)
            blk["oh2"], blk["oh2t"] = _group_onehot(out_c)
            blk["w2"] = _conv_as_kio(
                _kaiming_conv(next(keys), out_c, out_c, kernel_size[i]))
            blocks.append(blk)
        in_c = out_c
    params["blocks"] = blocks

    params["final_gamma"] = jnp.ones((1, in_c), jnp.float32)
    params["final_beta"] = jnp.zeros((1, in_c), jnp.float32)
    params["final_oh"], params["final_oht"] = _group_onehot(in_c)
    # TODO(synk): torch trunc_normal_ truncates at absolute ±2 (≈±100σ at std=0.02);
    # plain normal * 0.02 is numerically indistinguishable here.
    params["fc_w"] = jax.random.normal(next(keys), (in_c, num_outputs),
                                       jnp.float32) * 0.02               # (C, O)
    params["fc_b"] = jnp.zeros((1, num_outputs), jnp.float32)
    return params


def resnet_forward(x_ncl, params):
    # x_ncl: (B, C_in, L) -> internal channels-last (B, L, C)
    x = jnp.transpose(x_ncl, (0, 2, 1))
    x = stem_pool_pallas(x, params["stem_w"], K=params["stem_k"])   # conv + maxpool
    for blk in params["blocks"]:
        x = basic_block_pallas(x, blk)                              # one call / block
    out = head_pallas(x, params["final_gamma"], params["final_beta"],
                      params["final_oh"], params["final_oht"],
                      params["fc_w"], params["fc_b"])               # GN + pool + FC
    return out


if __name__ == "__main__":
    key = jax.random.PRNGKey(0)
    kx, kp = jax.random.split(key)

    B, C_IN, L = 2, 12, 64       # L chosen so every L_out is a multiple of 8
    STAGES = (1, 1)
    NUM_OUTPUTS = 5
    WIDTH = 32                   # widths per stage: [32, 64]

    x = jax.random.normal(kx, (B, C_IN, L), jnp.float32)
    params = init_params(kp, stages=STAGES, num_outputs=NUM_OUTPUTS,
                         in_channels=C_IN, width=WIDTH,
                         kernel_size=3, stem_kernel_size=7)

    out = resnet_forward(x, params)
    out = jax.block_until_ready(out)
    assert out.shape == (B, NUM_OUTPUTS), out.shape
    assert bool(jnp.all(jnp.isfinite(out)))
    print("KERNEL_OK")
</pallas_src>

<mosaic_0001>
module attributes {stable_mosaic.version = 11 : i64} {
  func.func @_stem_kernel(%arg0: i32, %arg1: memref<1x64x12xf32, #tpu.memory_space<vmem>>, %arg2: memref<7x12x32xbf16, #tpu.memory_space<vmem>>, %arg3: memref<1x16x32xf32, #tpu.memory_space<vmem>>, %arg4: memref<70x12xf32, #tpu.memory_space<vmem>>, %arg5: memref<34x32xf32, #tpu.memory_space<vmem>>) attributes {dimension_semantics = [#tpu.dimension_semantics<parallel>], iteration_bounds = array<i64: 2>, scalar_prefetch = 0 : i64, scratch_operands = 2 : i64, tpu.core_type = #tpu.core_type<tc>, window_params = [{transform_indices = @transform_0, window_bounds = array<i64: 1, 64, 12>}, {pipeline_mode = #tpu.pipeline_mode<synchronous>, transform_indices = @transform_1, window_bounds = array<i64: 7, 12, 32>}, {transform_indices = @transform_2, window_bounds = array<i64: 1, 16, 32>}]} {
    %c0 = arith.constant 0 : index
    %c0_0 = arith.constant 0 : index
    %c0_1 = arith.constant 0 : index
    %0 = vector.load %arg1[%c0, %c0_0, %c0_1] : memref<1x64x12xf32, #tpu.memory_space<vmem>>, vector<1x64x12xf32>
    %1 = vector.shape_cast %0 : vector<1x64x12xf32> to vector<64x12xf32>
    %cst = arith.constant 0.000000e+00 : f32
    %2 = vector.broadcast %cst : f32 to vector<3x12xf32>
    %c0_2 = arith.constant 0 : index
    %c0_3 = arith.constant 0 : index
    %3 = vector.load %arg4[%c0_2, %c0_3] : memref<70x12xf32, #tpu.memory_space<vmem>>, vector<3x12xf32>
    tpu.vector_store %arg4[%c0_2, %c0_3], %2 {strides = array<i32>} : memref<70x12xf32, #tpu.memory_space<vmem>>, vector<3x12xf32>,
    %c67 = arith.constant 67 : index
    %c0_4 = arith.constant 0 : index
    %4 = vector.load %arg4[%c67, %c0_4] : memref<70x12xf32, #tpu.memory_space<vmem>>, vector<3x12xf32>
    tpu.vector_store %arg4[%c67, %c0_4], %2 {strides = array<i32>} : memref<70x12xf32, #tpu.memory_space<vmem>>, vector<3x12xf32>,
    %c3 = arith.constant 3 : index
    %c0_5 = arith.constant 0 : index
    %5 = vector.load %arg4[%c3, %c0_5] : memref<70x12xf32, #tpu.memory_space<vmem>>, vector<64x12xf32>
    tpu.vector_store %arg4[%c3, %c0_5], %1 {strides = array<i32>} : memref<70x12xf32, #tpu.memory_space<vmem>>, vector<64x12xf32>,
    %cst_6 = arith.constant 0.000000e+00 : f32
    %6 = vector.broadcast %cst_6 : f32 to vector<32x32xf32>
    %c0_7 = arith.constant 0 : index
    %c0_8 = arith.constant 0 : index
    %7 = tpu.strided_load %arg4[%c0_7, %c0_8] {strides = array<i32: 2, 1>} : memref<70x12xf32, #tpu.memory_space<vmem>>, vector<32x12xf32>
    %8 = arith.truncf %7 : vector<32x12xf32> to vector<32x12xbf16>
    %c0_9 = arith.constant 0 : index
    %c0_10 = arith.constant 0 : index
    %c0_11 = arith.constant 0 : index
    %9 = vector.load %arg2[%c0_9, %c0_10, %c0_11] : memref<7x12x32xbf16, #tpu.memory_space<vmem>>, vector<1x12x32xbf16>
    %10 = vector.shape_cast %9 : vector<1x12x32xbf16> to vector<12x32xbf16>
    %cst_12 = arith.constant dense<0.000000e+00> : vector<32x32xf32>
    %11 = tpu.matmul %8, %10, %cst_12 {dimension_numbers = #tpu.dot_dimension_numbers<[1], [0], [0], [1], [0, 0, 1, 1], [], []>} : vector<32x12xbf16>, vector<12x32xbf16>, vector<32x32xf32> -> vector<32x32xf32>
    %12 = arith.addf %6, %11 : vector<32x32xf32>
    %c1 = arith.constant 1 : index
    %c0_13 = arith.constant 0 : index
    %13 = tpu.strided_load %arg4[%c1, %c0_13] {strides = array<i32: 2, 1>} : memref<70x12xf32, #tpu.memory_space<vmem>>, vector<32x12xf32>
    %14 = arith.truncf %13 : vector<32x12xf32> to vector<32x12xbf16>
    %c1_14 = arith.constant 1 : index
    %c0_15 = arith.constant 0 : index
    %c0_16 = arith.constant 0 : index
    %15 = vector.load %arg2[%c1_14, %c0_15, %c0_16] : memref<7x12x32xbf16, #tpu.memory_space<vmem>>, vector<1x12x32xbf16>
    %16 = vector.shape_cast %15 : vector<1x12x32xbf16> to vector<12x32xbf16>
    %cst_17 = arith.constant dense<0.000000e+00> : vector<32x32xf32>
    %17 = tpu.matmul %14, %16, %cst_17 {dimension_numbers = #tpu.dot_dimension_numbers<[1], [0], [0], [1], [0, 0, 1, 1], [], []>} : vector<32x12xbf16>, vector<12x32xbf16>, vector<32x32xf32> -> vector<32x32xf32>
    %18 = arith.addf %12, %17 : vector<32x32xf32>
    %c2 = arith.constant 2 : index
    %c0_18 = arith.constant 0 : index
    %19 = tpu.strided_load %arg4[%c2, %c0_18] {strides = array<i32: 2, 1>} : memref<70x12xf32, #tpu.memory_space<vmem>>, vector<32x12xf32>
    %20 = arith.truncf %19 : vector<32x12xf32> to vector<32x12xbf16>
    %c2_19 = arith.constant 2 : index
    %c0_20 = arith.constant 0 : index
    %c0_21 = arith.constant 0 : index
    %21 = vector.load %arg2[%c2_19, %c0_20, %c0_21] : memref<7x12x32xbf16, #tpu.memory_space<vmem>>, vector<1x12x32xbf16>
    %22 = vector.shape_cast %21 : vector<1x12x32xbf16> to vector<12x32xbf16>
    %cst_22 = arith.constant dense<0.000000e+00> : vector<32x32xf32>
    %23 = tpu.matmul %20, %22, %cst_22 {dimension_numbers = #tpu.dot_dimension_numbers<[1], [0], [0], [1], [0, 0, 1, 1], [], []>} : vector<32x12xbf16>, vector<12x32xbf16>, vector<32x32xf32> -> vector<32x32xf32>
    %24 = arith.addf %18, %23 : vector<32x32xf32>
    %c3_23 = arith.constant 3 : index
    %c0_24 = arith.constant 0 : index
    %25 = tpu.strided_load %arg4[%c3_23, %c0_24] {strides = array<i32: 2, 1>} : memref<70x12xf32, #tpu.memory_space<vmem>>, vector<32x12xf32>
    %26 = arith.truncf %25 : vector<32x12xf32> to vector<32x12xbf16>
    %c3_25 = arith.constant 3 : index
    %c0_26 = arith.constant 0 : index
    %c0_27 = arith.constant 0 : index
    %27 = vector.load %arg2[%c3_25, %c0_26, %c0_27] : memref<7x12x32xbf16, #tpu.memory_space<vmem>>, vector<1x12x32xbf16>
    %28 = vector.shape_cast %27 : vector<1x12x32xbf16> to vector<12x32xbf16>
    %cst_28 = arith.constant dense<0.000000e+00> : vector<32x32xf32>
    %29 = tpu.matmul %26, %28, %cst_28 {dimension_numbers = #tpu.dot_dimension_numbers<[1], [0], [0], [1], [0, 0, 1, 1], [], []>} : vector<32x12xbf16>, vector<12x32xbf16>, vector<32x32xf32> -> vector<32x32xf32>
    %30 = arith.addf %24, %29 : vector<32x32xf32>
    %c4 = arith.constant 4 : index
    %c0_29 = arith.constant 0 : index
    %31 = tpu.strided_load %arg4[%c4, %c0_29] {strides = array<i32: 2, 1>} : memref<70x12xf32, #tpu.memory_space<vmem>>, vector<32x12xf32>
    %32 = arith.truncf %31 : vector<32x12xf32> to vector<32x12xbf16>
    %c4_30 = arith.constant 4 : index
    %c0_31 = arith.constant 0 : index
    %c0_32 = arith.constant 0 : index
    %33 = vector.load %arg2[%c4_30, %c0_31, %c0_32] : memref<7x12x32xbf16, #tpu.memory_space<vmem>>, vector<1x12x32xbf16>
    %34 = vector.shape_cast %33 : vector<1x12x32xbf16> to vector<12x32xbf16>
    %cst_33 = arith.constant dense<0.000000e+00> : vector<32x32xf32>
    %35 = tpu.matmul %32, %34, %cst_33 {dimension_numbers = #tpu.dot_dimension_numbers<[1], [0], [0], [1], [0, 0, 1, 1], [], []>} : vector<32x12xbf16>, vector<12x32xbf16>, vector<32x32xf32> -> vector<32x32xf32>
    %36 = arith.addf %30, %35 : vector<32x32xf32>
    %c5 = arith.constant 5 : index
    %c0_34 = arith.constant 0 : index
    %37 = tpu.strided_load %arg4[%c5, %c0_34] {strides = array<i32: 2, 1>} : memref<70x12xf32, #tpu.memory_space<vmem>>, vector<32x12xf32>
    %38 = arith.truncf %37 : vector<32x12xf32> to vector<32x12xbf16>
    %c5_35 = arith.constant 5 : index
    %c0_36 = arith.constant 0 : index
    %c0_37 = arith.constant 0 : index
    %39 = vector.load %arg2[%c5_35, %c0_36, %c0_37] : memref<7x12x32xbf16, #tpu.memory_space<vmem>>, vector<1x12x32xbf16>
    %40 = vector.shape_cast %39 : vector<1x12x32xbf16> to vector<12x32xbf16>
    %cst_38 = arith.constant dense<0.000000e+00> : vector<32x32xf32>
    %41 = tpu.matmul %38, %40, %cst_38 {dimension_numbers = #tpu.dot_dimension_numbers<[1], [0], [0], [1], [0, 0, 1, 1], [], []>} : vector<32x12xbf16>, vector<12x32xbf16>, vector<32x32xf32> -> vector<32x32xf32>
    %42 = arith.addf %36, %41 : vector<32x32xf32>
    %c6 = arith.constant 6 : index
    %c0_39 = arith.constant 0 : index
    %43 = tpu.strided_load %arg4[%c6, %c0_39] {strides = array<i32: 2, 1>} : memref<70x12xf32, #tpu.memory_space<vmem>>, vector<32x12xf32>
    %44 = arith.truncf %43 : vector<32x12xf32> to vector<32x12xbf16>
    %c6_40 = arith.constant 6 : index
    %c0_41 = arith.constant 0 : index
    %c0_42 = arith.constant 0 : index
    %45 = vector.load %arg2[%c6_40, %c0_41, %c0_42] : memref<7x12x32xbf16, #tpu.memory_space<vmem>>, vector<1x12x32xbf16>
    %46 = vector.shape_cast %45 : vector<1x12x32xbf16> to vector<12x32xbf16>
    %cst_43 = arith.constant dense<0.000000e+00> : vector<32x32xf32>
    %47 = tpu.matmul %44, %46, %cst_43 {dimension_numbers = #tpu.dot_dimension_numbers<[1], [0], [0], [1], [0, 0, 1, 1], [], []>} : vector<32x12xbf16>, vector<12x32xbf16>, vector<32x32xf32> -> vector<32x32xf32>
    %48 = arith.addf %42, %47 : vector<32x32xf32>
    %cst_44 = arith.constant 0xFF800000 : f32
    %49 = vector.broadcast %cst_44 : f32 to vector<1x32xf32>
    %c0_45 = arith.constant 0 : index
    %c0_46 = arith.constant 0 : index
    %50 = vector.load %arg5[%c0_45, %c0_46] : memref<34x32xf32, #tpu.memory_space<vmem>>, vector<1x32xf32>
    tpu.vector_store %arg5[%c0_45, %c0_46], %49 {strides = array<i32>} : memref<34x32xf32, #tpu.memory_space<vmem>>, vector<1x32xf32>,
    %c33 = arith.constant 33 : index
    %c0_47 = arith.constant 0 : index
    %51 = vector.load %arg5[%c33, %c0_47] : memref<34x32xf32, #tpu.memory_space<vmem>>, vector<1x32xf32>
    tpu.vector_store %arg5[%c33, %c0_47], %49 {strides = array<i32>} : memref<34x32xf32, #tpu.memory_space<vmem>>, vector<1x32xf32>,
    %c1_48 = arith.constant 1 : index
    %c0_49 = arith.constant 0 : index
    %52 = vector.load %arg5[%c1_48, %c0_49] : memref<34x32xf32, #tpu.memory_space<vmem>>, vector<32x32xf32>
    tpu.vector_store %arg5[%c1_48, %c0_49], %48 {strides = array<i32>} : memref<34x32xf32, #tpu.memory_space<vmem>>, vector<32x32xf32>,
    %c0_50 = arith.constant 0 : index
    %c0_51 = arith.constant 0 : index
    %53 = tpu.strided_load %arg5[%c0_50, %c0_51] {strides = array<i32: 2, 1>} : memref<34x32xf32, #tpu.memory_space<vmem>>, vector<16x32xf32>
    %c1_52 = arith.constant 1 : index
    %c0_53 = arith.constant 0 : index
    %54 = tpu.strided_load %arg5[%c1_52, %c0_53] {strides = array<i32: 2, 1>} : memref<34x32xf32, #tpu.memory_space<vmem>>, vector<16x32xf32>
    %55 = arith.maximumf %53, %54 : vector<16x32xf32>
    %c2_54 = arith.constant 2 : index
    %c0_55 = arith.constant 0 : index
    %56 = tpu.strided_load %arg5[%c2_54, %c0_55] {strides = array<i32: 2, 1>} : memref<34x32xf32, #tpu.memory_space<vmem>>, vector<16x32xf32>
    %57 = arith.maximumf %55, %56 : vector<16x32xf32>
    %c0_56 = arith.constant 0 : index
    %c0_57 = arith.constant 0 : index
    %c0_58 = arith.constant 0 : index
    %58 = vector.load %arg3[%c0_56, %c0_57, %c0_58] : memref<1x16x32xf32, #tpu.memory_space<vmem>>, vector<1x16x32xf32>
    %59 = vector.shape_cast %58 : vector<1x16x32xf32> to vector<16x32xf32>
    %60 = vector.shape_cast %57 : vector<16x32xf32> to vector<1x16x32xf32>
    tpu.vector_store %arg3[%c0_56, %c0_57, %c0_58], %60 {strides = array<i32>} : memref<1x16x32xf32, #tpu.memory_space<vmem>>, vector<1x16x32xf32>,
    return
  }
  func.func @transform_0(%arg0: i32) -> (i32, i32, i32) {
    %c0_i32 = arith.constant 0 : i32
    %c0_i32_0 = arith.constant 0 : i32
    %c0_i32_1 = arith.constant 0 : i32
    return %arg0, %c0_i32, %c0_i32_0 : i32, i32, i32
  }
  func.func @transform_1(%arg0: i32) -> (i32, i32, i32) {
    %c0_i32 = arith.constant 0 : i32
    %c0_i32_0 = arith.constant 0 : i32
    %c0_i32_1 = arith.constant 0 : i32
    %c0_i32_2 = arith.constant 0 : i32
    return %c0_i32, %c0_i32_0, %c0_i32_1 : i32, i32, i32
  }
  func.func @transform_2(%arg0: i32) -> (i32, i32, i32) {
    %c0_i32 = arith.constant 0 : i32
    %c0_i32_0 = arith.constant 0 : i32
    %c0_i32_1 = arith.constant 0 : i32
    return %arg0, %c0_i32, %c0_i32_0 : i32, i32, i32
  }
}

</mosaic_0001>

<bundles_post_ra>
// kernel: tpu_custom_call.1
= control target key start
LH: loop header
LB: loop body
LE: loop exit
PB: predicated region body
PF: predicated region fallthrough
CT: control target
= control target key end

     0   :  { %7 = vsyncpa [#allocation5], 0  ;;  %s975_s0 = inlined_call_operand.vmem [shape: f32[2,64,12], index: 0, kind: input, shape index: {}]   ;;  %s976_s1 = inlined_call_operand.vmem [shape: bf16[7,12,32], index: 1, kind: input, shape index: {}]   ;;  %s977_s2 = inlined_call_operand.hbm [shape: f32[2,16,32], index: 2, kind: output, shape index: {}]  }
   0x1   :  { %9 = vsyncpa [#allocation5 + $0x1], 0  ;;  %s809_s9 = smov 0   ;;  %s811_s10 = smov 0  }
   0x2   :  { %s813_s11 = smov 0   ;;  %s815_s12 = smov 0  }
   0x3 LB: > { %s830_s13 = sadd.s32 4294967295, %s788_s12   ;;  %s607_s14 = sadd.s32 4294967294, %s788_s12   ;;  %s788_s12 = sphi %s815_s12, %s983_s12   ;;  %s784_s11 = sphi %s813_s11, %s982_s11   ;;  %s780_s10 = sphi %s811_s10, %s981_s10   ;;  %s776_s9 = sphi %s809_s9, %s980_s9  }
   0x4   : > { %s834_s15 = sadd.s32 1, %s788_s12   ;;  %s69_s16 = sadd.s32 1, %s784_s11 }
   0x5   : > { %s66_s17 = ssub.s32 %s788_s12, %s834_s15  ;;  %p79_p0 = scmp.ne.s32.totalorder %s784_s11, %s780_s10 }
   0x6   : > { %p67_p1 = scmp.eq.s32.totalorder %s66_s17, 0  ;;  %p80_p2 = scmp.eq.s32.totalorder %s830_s13, 1 }
   0x7   : > { %p85_p3 = scmp.ne.s32.totalorder %s780_s10, %s776_s9  ;;  %p86_p4 = scmp.eq.s32.totalorder %s607_s14, 1 }
   0x8   : > { %s845_s18 = scalar_select %p67_p1, %s784_s11, %s69_s16  }
   0x9   : > { %p847_p5 = por %p80_p2, %p79_p0  ;;  %p851_p6 = por %p86_p4, %p85_p3 }
   0xa   : > { %p610_p7 = scmp.ge.s32.totalorder %s788_s12, 1  ;;  %p115_p8 = scmp.lt.s32.totalorder %s788_s12, 3 }
   0xc   : > { %p116_p9 = pnand %p610_p7, %p115_p8 }
   0xd   : > { %p137_p10 = scmp.lt.s32.totalorder (!%p116_p9), %s830_s13, 1  ;;  %s134_s7 = sand.u32 (!%p116_p9), 1, %s780_s10  }
   0xe   : > { %119 = sbr.rel (%p116_p9) target bundleno = 245 (0xf5), region = 28  ;;  %s681_s16 = sshll.u32 (!%p116_p9), %s830_s13, 4 }
   0xf   : > { %s530_s25 = scalar_lea.sflag (!%p116_p9), [#allocation5], %s134_s7  ;;  %s746_s29 = scalar_lea.hbm (!%p116_p9), %s977_s2, 32 }
  0x13   : > { %v618_v0 = vld [vmem:[%s976_s1 + $0x8] sm:$0xf]  ;;  %v675_v1 = vld [vmem:[%s976_s1 + $0x8] sm:$0x30]  ;;  %vm198_vm0 = vcmask 1045504   ;;  %s138_s5 = scalar_select %p137_p10, %s830_s13, 1 }
  0x14   : > { %v619_v2 = vor.u32 %v675_v1, %v618_v0  ;;  %v624_v3 = vld [vmem:[%s976_s1] sm:$0xf]  ;;  %v674_v4 = vld [vmem:[%s976_s1] sm:$0x30]  ;;  %v632_v5 = vld [vmem:[%s976_s1 + $0x10] sm:$0xf] }
  0x15   : > { %v625_v6 = vor.u32 %v674_v4, %v624_v3  ;;  %v676_v7 = vld [vmem:[%s976_s1 + $0x10] sm:$0x30]  ;;  %vm151_vm1 = vcmask 92160   ;;  %v790_v10 = vmov 0.0   ;;  %vm154_vm2 = vcmask 97280   ;;  %s673_s8 = sshll.u32 %s138_s5, 6 }
  0x16   : > { %v200_v8 = vsel %vm198_vm0, %v619_v2, 0  ;;  %v633_v9 = vor.u32 %v676_v7, %v632_v5  ;;  %152 = vst.msk [vmem:[#allocation2] sm:$0x7] %vm151_vm1, %v790_v10  ;;  %v664_v11 = vld [vmem:[%s976_s1 + $0x30] sm:$0xf]  ;;  %s141_s22 = scalar_lea.vmem %s975_s0, %s673_s8  ;;  %vm504_vm3 = vcmask 253952  }
  0x17   : > { %209 = vmatpush.bf16.msra.mxu0 %v200_v8  ;;  %682 = vmatpush.bf16.msra.mxu3 %v200_v8  ;;  %v233_v12 = vsel %vm198_vm0, %v625_v6, 0  ;;  %153 = vst.msk [vmem:[#allocation2 + $0x43] sm:$0x7] %vm151_vm1, %v790_v10  ;;  %v680_v13 = vld [vmem:[%s976_s1 + $0x30] sm:$0x30]  ;;  %v143_v18 = vld [vmem:[%s141_s22] sm:$0xff] }
  0x18   : > { %242 = vmatpush.bf16.msra.mxu1 %v233_v12  ;;  %v279_v14 = vsel %vm198_vm0, %v633_v9, 0  ;;  %v665_v15 = vor.u32 %v680_v13, %v664_v11  ;;  %v656_v16 = vld [vmem:[%s976_s1 + $0x28] sm:$0xf]  ;;  %v679_v17 = vld [vmem:[%s976_s1 + $0x28] sm:$0x30]  ;;  %v145_v20 = vld [vmem:[%s141_s22 + $0x10] sm:$0xff] }
  0x19   : > { %288 = vmatpush.bf16.msra.mxu2 %v279_v14  ;;  %v144_v19 = vld [vmem:[%s141_s22 + $0x8] sm:$0xff]  ;;  %v657_v21 = vor.u32 %v679_v17, %v656_v16  ;;  %v146_v22 = vld [vmem:[%s141_s22 + $0x18] sm:$0xff]  ;;  %155 = vst.msk [vmem:[#allocation2 + $0x3] sm:$0xff] %vm154_vm2, %v143_v18  ;;  %v147_v24 = vld [vmem:[%s141_s22 + $0x20] sm:$0xff]  ;;  %vm507_vm4 = vcmask 261120   ;;  %s611_s8 = sshll.u32 %s134_s7, 4 }
  0x1a   : > { %v479_v23 = vsel %vm198_vm0, %v665_v15, 0  ;;  %156 = vst.msk [vmem:[#allocation2 + $0xb] sm:$0xff] %vm154_vm2, %v144_v19  ;;  %v640_v26 = vld [vmem:[%s976_s1 + $0x18] sm:$0xf]  ;;  %v148_v27 = vld [vmem:[%s141_s22 + $0x28] sm:$0xff]  ;;  %v149_v30 = vld [vmem:[%s141_s22 + $0x30] sm:$0xff] }
  0x1b   : > { %v429_v25 = vsel %vm198_vm0, %v657_v21, 0  ;;  %157 = vst.msk [vmem:[#allocation2 + $0x13] sm:$0xff] %vm154_vm2, %v145_v20  ;;  %v677_v28 = vld [vmem:[%s976_s1 + $0x18] sm:$0x30]  ;;  %v648_v29 = vld [vmem:[%s976_s1 + $0x20] sm:$0xf] }
  0x1c   : > { %438 = vmatpush.bf16.msrb.mxu1 %v429_v25  ;;  %158 = vst.msk [vmem:[#allocation2 + $0x1b] sm:$0xff] %vm154_vm2, %v146_v22  ;;  %v641_v31 = vor.u32 %v677_v28, %v640_v26  ;;  %v678_v32 = vld [vmem:[%s976_s1 + $0x20] sm:$0x30]  ;;  %v150_v33 = vld [vmem:[%s141_s22 + $0x38] sm:$0xff]  ;;  %s136_s14 = scalar_lea.vmem [#allocation4], %s611_s8  ;;  %s541_s22 = scalar_lea.hbm %s977_s2, %s681_s16 }
  0x1d   : > { %488 = vmatpush.bf16.msrb.mxu2 %v479_v23  ;;  %159 = vst.msk [vmem:[#allocation2 + $0x23] sm:$0xff] %vm154_vm2, %v147_v24  ;;  %v649_v34 = vor.u32 %v678_v32, %v648_v29  ;;  %v791_v24 = vmov -inf   ;;  %s542_s23 = sshll.u32 %s136_s14, 4  ;;  %s544_s24 = sshll.u32 %s541_s22, 4  ;;  %s543_s23 = int_to_ptr.vmem [resolvable:$true] %s542_s23  ;;  %s545_s24 = int_to_ptr.hbm [resolvable:$true] %s544_s24 }
  0x1e   : > { %160 = vst.msk [vmem:[#allocation2 + $0x2b] sm:$0xff] %vm154_vm2, %v148_v27  ;;  %v329_v35 = vsel %vm198_vm0, %v641_v31, 0  ;;  %s740_s26 = sshra.s32 %s545_s24, 4  ;;  %s741_s26 = int_to_ptr.hbm [resolvable:$true] %s740_s26 }
  0x1f   : > { %161 = vst.msk [vmem:[#allocation2 + $0x33] sm:$0xff] %vm154_vm2, %v149_v30  ;;  %338 = vmatpush.bf16.msrb.mxu3 %v329_v35  ;;  %v379_v36 = vsel %vm198_vm0, %v649_v34, 0  ;;  %s742_s13 = scalar_lea.hbm %s741_s26, 16  ;;  %p747_p0 = scmp.lt.s32.totalorder %s741_s26, %s977_s2 }
  0x20   : > { %162 = vst.msk [vmem:[#allocation2 + $0x3b] sm:$0xff] %vm154_vm2, %v150_v33  ;;  %388 = vmatpush.bf16.msrb.mxu0 %v379_v36  ;;  %p743_p11 = scmp.ne.s32.totalorder %s741_s26, %s742_s13  ;;  %p748_p1 = scmp.lt.s32.totalorder %s746_s29, %s742_s13 }
  0x21   : > { %v175_v37 = vld [vmem:[#allocation2 + $0x1] ss:$2 sm:$0xff]  ;;  %v163_v38 = vld [vmem:[#allocation2] ss:$2 sm:$0xff]  ;;  %505 = vst.msk [vmem:[#allocation3] sm:$0x1] %vm504_vm3, %v791_v24 }
  0x22   : > { %v255_v39 = vld [vmem:[#allocation2 + $0x2] ss:$2 sm:$0xff]  ;;  %v305_v58 = vld [vmem:[#allocation2 + $0x3] ss:$2 sm:$0xff]  ;;  %p744_p12 = pnand %p743_p11, %p847_p5  ;;  %p749_p2 = por %p748_p1, %p747_p0 }
  0x23   : > { %v177_v40 = vld [vmem:[#allocation2 + $0x11] ss:$2 sm:$0xff]  ;;  %v165_v41 = vld [vmem:[#allocation2 + $0x10] ss:$2 sm:$0xff] }
  0x24   : > { %v257_v42 = vld [vmem:[#allocation2 + $0x12] ss:$2 sm:$0xff]  ;;  %v182_v43 = vpack.c.bf16 %v177_v40, %v175_v37  ;;  %v170_v44 = vpack.c.bf16 %v165_v41, %v163_v38  ;;  %v307_v59 = vld [vmem:[#allocation2 + $0x13] ss:$2 sm:$0xff]  ;;  %p745_p13 = pneg %p744_p12 }
  0x25   : > { %v262_v45 = vpack.c.bf16 %v257_v42, %v255_v39  ;;  %v179_v46 = vld [vmem:[#allocation2 + $0x21] ss:$2 sm:$0xff]  ;;  %v355_v49 = vld [vmem:[#allocation2 + $0x4] ss:$2 sm:$0xff]  ;;  %v357_v52 = vld [vmem:[#allocation2 + $0x14] ss:$2 sm:$0xff]  ;;  %v312_v60 = vpack.c.bf16 %v307_v59, %v305_v58 }
  0x26   : > { %620 = vmatmul.msk.bf16.vlgmr.msra.gmra.mxu0 %vm154_vm2, %v182_v43  ;;  %626 = vmatmul.msk.bf16.vlgmr.msra.gmra.mxu1 %vm154_vm2, %v170_v44  ;;  %v167_v50 = vld [vmem:[#allocation2 + $0x20] ss:$2 sm:$0xff]  ;;  %v362_v56 = vpack.c.bf16 %v357_v52, %v355_v49  ;;  %v405_v61 = vld [vmem:[#allocation2 + $0x5] ss:$2 sm:$0xff]  ;;  %v407_v62 = vld [vmem:[#allocation2 + $0x15] ss:$2 sm:$0xff]  ;;  %p750_p3 = pnand %p749_p2, %p745_p13 }
  0x27   : > { %v181_v47 = vld [vmem:[#allocation2 + $0x31] ss:$2 sm:$0xff]  ;;  %634 = vmatmul.msk.bf16.vlgmr.msra.gmra.mxu2 %vm154_vm2, %v262_v45  ;;  %v169_v51 = vld [vmem:[#allocation2 + $0x30] ss:$2 sm:$0xff]  ;;  %v412_v3 = vpack.c.bf16 %v407_v62, %v405_v61 }
  0x28   : > { %v183_v48 = vpack.c.bf16 %v181_v47, %v179_v46  ;;  %v259_v53 = vld [vmem:[#allocation2 + $0x22] ss:$2 sm:$0xff]  ;;  %v261_v54 = vld [vmem:[#allocation2 + $0x32] ss:$2 sm:$0xff]  ;;  %v171_v55 = vpack.c.bf16 %v169_v51, %v167_v50  ;;  %v309_v5 = vld [vmem:[#allocation2 + $0x23] ss:$2 sm:$0xff] }
  0x29   : > { %v263_v57 = vpack.c.bf16 %v261_v54, %v259_v53  ;;  %v359_v63 = vld [vmem:[#allocation2 + $0x24] ss:$2 sm:$0xff]  ;;  %v361_v0 = vld [vmem:[#allocation2 + $0x34] ss:$2 sm:$0xff]  ;;  %v311_v6 = vld [vmem:[#allocation2 + $0x33] ss:$2 sm:$0xff] }
  0x2a   : > { %621 = vmatmul.msk.bf16.vlgmr.msra.gmra.mxu3 %vm154_vm2, %v183_v48  ;;  %v455_v1 = vld [vmem:[#allocation2 + $0x6] ss:$2 sm:$0xff]  ;;  %v457_v2 = vld [vmem:[#allocation2 + $0x16] ss:$2 sm:$0xff]  ;;  %v363_v4 = vpack.c.bf16 %v361_v0, %v359_v63  ;;  %v313_v8 = vpack.c.bf16 %v311_v6, %v309_v5  ;;  %v409_v9 = vld [vmem:[#allocation2 + $0x25] ss:$2 sm:$0xff] }
  0x2b   : > { %v462_v7 = vpack.c.bf16 %v457_v2, %v455_v1  ;;  %v411_v10 = vld [vmem:[#allocation2 + $0x35] ss:$2 sm:$0xff]  ;;  %v459_v11 = vld [vmem:[#allocation2 + $0x26] ss:$2 sm:$0xff]  ;;  %v461_v12 = vld [vmem:[#allocation2 + $0x36] ss:$2 sm:$0xff] }
  0x2c   : > { %v413_v13 = vpack.c.bf16 %v411_v10, %v409_v9  ;;  %v463_v14 = vpack.c.bf16 %v461_v12, %v459_v11 }
  0x36   : > { %627 = vmatmul.msk.bf16.gmra.mxu1 %vm154_vm2, %v171_v55  ;;  %650 = vmatmul.msk.bf16.vlgmr.msrb.gmra.mxu0 %vm154_vm2, %v362_v56 }
  0x37   : > { %635 = vmatmul.msk.bf16.gmra.mxu2 %vm154_vm2, %v263_v57 }
  0x3a   : > { %642 = vmatmul.msk.bf16.vlgmr.msrb.gmra.mxu3 %vm154_vm2, %v312_v60 }
  0x46   : > { %658 = vmatmul.msk.bf16.vlgmr.msrb.gmra.mxu1 %vm154_vm2, %v412_v3  ;;  %651 = vmatmul.msk.bf16.gmra.mxu0 %vm154_vm2, %v363_v4 }
  0x47   : > { %666 = vmatmul.msk.bf16.vlgmr.msrb.gmra.mxu2 %vm154_vm2, %v462_v7 }
  0x4a   : > { %643 = vmatmul.msk.bf16.gmra.mxu3 %vm154_vm2, %v313_v8 }
  0x56   : > { %659 = vmatmul.msk.bf16.gmra.mxu1 %vm154_vm2, %v413_v13 }
  0x57   : > { %667 = vmatmul.msk.bf16.gmra.mxu2 %vm154_vm2, %v463_v14 }
  0xa3   : > { %v244_v15 = vpop.f32.mrf.mxu1  ;;  %v211_v18 = vpop.f32.mrf.mxu0 }
  0xa4   : > { %v245_v27 = vadd.f32 %v244_v15, %v211_v18 }
  0xaa   : > { %v290_v16 = vpop.f32.mrf.mxu2 }
  0xab   : > { %v246_v17 = vpop.f32.mrf.mxu1  ;;  %v213_v23 = vpop.f32.mrf.mxu0  ;;  %v300_v30 = vadd.f32 %v290_v16, %v245_v27 }
  0xac   : > { %v247_v35 = vadd.f32 %v246_v17, %v213_v23 }
  0xad   : > { %v216_v19 = vpop.f32.mrf.mxu3 }
  0xb2   : > { %v292_v20 = vpop.f32.mrf.mxu2 }
  0xb3   : > { %v249_v21 = vpop.f32.mrf.mxu1  ;;  %v390_v29 = vpop.f32.mrf.mxu0  ;;  %v301_v38 = vadd.f32 %v292_v20, %v247_v35 }
  0xb4   : > { %v250_v45 = vadd.f32 %v249_v21, %v216_v19 }
  0xb5   : > { %v218_v22 = vpop.f32.mrf.mxu3 }
  0xba   : > { %v295_v25 = vpop.f32.mrf.mxu2 }
  0xbb   : > { %v251_v26 = vpop.f32.mrf.mxu1  ;;  %v392_v37 = vpop.f32.mrf.mxu0  ;;  %v302_v47 = vadd.f32 %v295_v25, %v250_v45 }
  0xbc   : > { %v252_v54 = vadd.f32 %v251_v26, %v218_v22 }
  0xbd   : > { %v340_v28 = vpop.f32.mrf.mxu3 }
  0xbe   : > { %v350_v32 = vadd.f32 %v340_v28, %v300_v30 }
  0xc0   : > { %v400_v36 = vadd.f32 %v390_v29, %v350_v32 }
  0xc2   : > { %v297_v31 = vpop.f32.mrf.mxu2 }
  0xc3   : > { %v440_v33 = vpop.f32.mrf.mxu1  ;;  %v395_v49 = vpop.f32.mrf.mxu0  ;;  %v303_v57 = vadd.f32 %v297_v31, %v252_v54 }
  0xc4   : > { %v450_v39 = vadd.f32 %v440_v33, %v400_v36 }
  0xc5   : > { %v342_v34 = vpop.f32.mrf.mxu3 }
  0xc6   : > { %v351_v41 = vadd.f32 %v342_v34, %v301_v38 }
  0xc8   : > { %v401_v46 = vadd.f32 %v392_v37, %v351_v41 }
  0xca   : > { %v490_v40 = vpop.f32.mrf.mxu2 }
  0xcb   : > { %v500_v42 = vadd.f32 %v490_v40, %v450_v39  ;;  %v442_v43 = vpop.f32.mrf.mxu1  ;;  %v397_v62 = vpop.f32.mrf.mxu0 }
  0xcc   : > { %v451_v48 = vadd.f32 %v442_v43, %v401_v46 }
  0xcd   : > { %508 = vst.msk [vmem:[#allocation3 + $0x1] sm:$0xff] %vm507_vm4, %v500_v42  ;;  %v345_v44 = vpop.f32.mrf.mxu3 }
  0xce   : > { %v352_v51 = vadd.f32 %v345_v44, %v302_v47 }
  0xd0   : > { %v402_v55 = vadd.f32 %v395_v49, %v352_v51 }
  0xd2   : > { %v492_v50 = vpop.f32.mrf.mxu2 }
  0xd3   : > { %v501_v52 = vadd.f32 %v492_v50, %v451_v48  ;;  %v445_v53 = vpop.f32.mrf.mxu1 }
  0xd4   : > { %v452_v58 = vadd.f32 %v445_v53, %v402_v55 }
  0xd5   : > { %509 = vst.msk [vmem:[#allocation3 + $0x9] sm:$0xff] %vm507_vm4, %v501_v52  ;;  %v347_v56 = vpop.f32.mrf.mxu3 }
  0xd6   : > { %v353_v60 = vadd.f32 %v347_v56, %v303_v57 }
  0xd8   : > { %v403_v4 = vadd.f32 %v397_v62, %v353_v60 }
  0xda   : > { %v495_v59 = vpop.f32.mrf.mxu2 }
  0xdb   : > { %v502_v61 = vadd.f32 %v495_v59, %v452_v58  ;;  %v447_v2 = vpop.f32.mrf.mxu1 }
  0xdc   : > { %v512_v63 = vld [vmem:[#allocation3] ss:$2 sm:$0xff]  ;;  %v516_v0 = vld [vmem:[#allocation3 + $0x1] ss:$2 sm:$0xff]  ;;  %v453_v6 = vadd.f32 %v447_v2, %v403_v4 }
  0xdd   : > { %510 = vst.msk [vmem:[#allocation3 + $0x11] sm:$0xff] %vm507_vm4, %v502_v61  ;;  %v519_v1 = vmax.f32 %v512_v63, %v516_v0  ;;  %v522_v3 = vld [vmem:[#allocation3 + $0x2] ss:$2 sm:$0xff] }
  0xdf   : > { %v525_v5 = vmax.f32 %v519_v1, %v522_v3 }
  0xe1   : > { %527 = vst.msk [vmem:[%s136_s14] sm:$0xff] %vm507_vm4, %v525_v5 }
  0xe2   : > { %v497_v7 = vpop.f32.mrf.mxu2 }
  0xe3   : > { %v503_v8 = vadd.f32 %v497_v7, %v453_v6 }
  0xe5   : > { %511 = vst.msk [vmem:[#allocation3 + $0x19] sm:$0xff] %vm507_vm4, %v503_v8 }
  0xec   : > { %v514_v9 = vld [vmem:[#allocation3 + $0x10] ss:$2 sm:$0xff]  ;;  %v518_v10 = vld [vmem:[#allocation3 + $0x11] ss:$2 sm:$0xff] }
  0xed   : > { %v520_v11 = vmax.f32 %v514_v9, %v518_v10  ;;  %v524_v12 = vld [vmem:[#allocation3 + $0x12] ss:$2 sm:$0xff] }
  0xef   : > { %v526_v13 = vmax.f32 %v520_v11, %v524_v12 }
  0xf1   : > { %528 = vst.msk [vmem:[%s136_s14 + $0x8] sm:$0xff] %vm507_vm4, %v526_v13 }
  0xf2   : > { %753 = shalt.err (!%p750_p3)
}
  0xf3   : > { %s792_s4 = smov 128   ;;  %s793_s5 = smov 8  }
  0xf4   : > { %683 = dma.vmem_to_hbm [thread:$0]  (%p847_p5), %s543_s23, 256, %s545_s24, %s530_s25, %s792_s4, %s792_s4, %s793_s5  }
  0xf5 PF: > { %p689_p4 = scmp.ge.s32.totalorder %s788_s12, 2  ;;  %s559_s6 = sand.u32 1, %s776_s9  }
  0xf6   : > { %s560_s7 = scalar_lea.sflag [#allocation5], %s559_s6 }
  0xf7   : > { %p686_p7 = pnand %p689_p4, %p851_p6 }
  0xf9   : > { %p687_p8 = pneg %p686_p7 }
  0xfb   : > { %771 = dma.done.wait (%p687_p8), %s560_s7, 256  }
  0xfc   : > { %773 = vsyncadd (%p687_p8), %s560_s7, 4294967040  ;;  %p12_p9 = scmp.ge.s32.totalorder %s834_s15, 4   ;;  %s980_s9 = smov %s780_s10 }
  0xfd   : > { %s981_s10 = smov %s784_s11  ;;  %s982_s11 = smov %s845_s18 }
  0xfe   : > { %s983_s12 = smov %s834_s15  ;;  %14 = sbr.rel (!%p12_p9) target bundleno = 3 (0x3), region = 101 }
 0x103   :  { %566 = vsyncpa [#allocation5], 1 }
 0x104   :  { %568 = vsyncpa [#allocation5 + $0x1], 1 }

</bundles_post_ra>
